<compile_context>
chip_gen: v5e
topology: v5e:2x2
jax: 0.10.0
libtpu: 0.0.40
codegen_flags: <defaults>
</compile_context>

<pallas_src>
import functools

import jax
import jax.numpy as jnp
import numpy as np
from jax.experimental import pallas as pl
from jax.experimental.pallas import tpu as pltpu


def _silu(v):
    return v * jax.nn.sigmoid(v)


def _round_up(n, m):
    return ((n + m - 1) // m) * m


# ----------------------------- Pallas kernel -------------------------------
def weighted_readout_kernel(x_ref, w0_ref, b0_ref, ws_ref, bs_ref, out_ref,
                            *, n_mid, num_targets):
    """One node tile of the fused gated MLP.

    Fused structure (all widths zero-padded to a common Dpad):
      level 0    : a = silu(x @ [lw0 | gw0] + [lb0 | gb0])
      level i<L-1: a = silu(a @ blockdiag(lw_i, gw_i) + [lb_i | gb_i])
      last level : a =       a @ blockdiag(lw_L, gw_L) + [lb_L | gb_L]
      out        = a[:, :T] * sigmoid(a[:, T:2T])
    Zero-padded rows/cols of the slabs contribute nothing (silu(0) = 0, and the
    matching weight rows of the next level are zero).
    """
    x = x_ref[...]

    # Fused first level (shared input, both halves get SiLU: it is never the last).
    a = jnp.dot(x, w0_ref[...], preferred_element_type=jnp.float32) + b0_ref[...]
    a = _silu(a)

    # Fused middle + last levels (block-diagonal weights).
    for li in range(n_mid):
        a = jnp.dot(a, ws_ref[li], preferred_element_type=jnp.float32) + bs_ref[li]
        if li < n_mid - 1:
            a = _silu(a)

    h = a[:, :num_targets]                                    # layers chain (no act)
    g = jax.nn.sigmoid(a[:, num_targets:2 * num_targets])     # gates chain (sigmoid)
    out_ref[...] = (h * g).astype(out_ref.dtype)


# ------------------------------- Wrapper ------------------------------------
def weighted_readout(x, layer_ws, layer_bs, gate_ws, gate_bs, *, node_tile=1024):
    """x: (N, in_feats). Weights (in, out), biases (1, out). Returns (N, num_targets)."""
    n_nodes, in_feats = x.shape
    L = len(layer_ws)
    assert L >= 2, "GatedMLP in WeightedReadOut always has >= 2 linear layers"
    # Layer widths d0 (=in_feats), d1, ..., dL (=num_targets).
    d = [layer_ws[0].shape[0]] + [w.shape[1] for w in layer_ws]
    num_targets = d[-1]
    n_mid = L - 1
    dpad = max(2 * di for di in d[1:])          # common fused width (zero padded)
    wdt = layer_ws[0].dtype

    # ---- pack parameters into 4 resident arrays -----------------------------
    # Level 0: shared input -> concatenate along output axis.
    w0 = jnp.zeros((d[0], dpad), wdt)
    w0 = w0.at[:, :d[1]].set(layer_ws[0]).at[:, d[1]:2 * d[1]].set(gate_ws[0])
    b0 = jnp.zeros((1, dpad), jnp.float32)
    b0 = b0.at[:, :d[1]].set(layer_bs[0].astype(jnp.float32))
    b0 = b0.at[:, d[1]:2 * d[1]].set(gate_bs[0].astype(jnp.float32))

    # Levels 1..L-1: block-diagonal weights acting on the carried [h | g] activation.
    w_slab = jnp.zeros((n_mid, dpad, dpad), wdt)
    b_slab = jnp.zeros((n_mid, 1, dpad), jnp.float32)
    for li in range(1, L):
        din, dout = d[li], d[li + 1]
        w_slab = w_slab.at[li - 1, :din, :dout].set(layer_ws[li])
        w_slab = w_slab.at[li - 1, din:2 * din, dout:2 * dout].set(gate_ws[li])
        b_slab = b_slab.at[li - 1, 0, :dout].set(layer_bs[li][0].astype(jnp.float32))
        b_slab = b_slab.at[li - 1, 0, dout:2 * dout].set(gate_bs[li][0].astype(jnp.float32))

    # ---- node tiling: large 8-aligned tiles, pad N up to a tile multiple ----
    nt = _round_up(min(node_tile, _round_up(n_nodes, 8)), 8)
    n_pad = _round_up(n_nodes, nt)
    x_in = jnp.pad(x, ((0, n_pad - n_nodes), (0, 0))) if n_pad != n_nodes else x

    kernel = functools.partial(weighted_readout_kernel,
                               n_mid=n_mid, num_targets=num_targets)

    out = pl.pallas_call(
        kernel,
        out_shape=jax.ShapeDtypeStruct((n_pad, num_targets), x.dtype),
        grid_spec=pltpu.PrefetchScalarGridSpec(
            num_scalar_prefetch=0,
            grid=(n_pad // nt,),
            in_specs=[
                pl.BlockSpec((nt, in_feats), lambda i: (i, 0)),     # x node tile
                pl.BlockSpec(w0.shape, lambda i: (0, 0)),           # resident params
                pl.BlockSpec(b0.shape, lambda i: (0, 0)),
                pl.BlockSpec(w_slab.shape, lambda i: (0, 0, 0)),
                pl.BlockSpec(b_slab.shape, lambda i: (0, 0, 0)),
            ],
            out_specs=pl.BlockSpec((nt, num_targets), lambda i: (i, 0)),
        ),
        compiler_params=pltpu.CompilerParams(
            dimension_semantics=("parallel",),
        ),
    )(x_in, w0, b0, w_slab, b_slab)

    return out[:n_nodes]


# --------------------------- Pure-JAX reference ------------------------------
def weighted_readout_ref(x, layer_ws, layer_bs, gate_ws, gate_bs):
    n_layers = len(layer_ws)
    h = x.astype(jnp.float32)
    for li, (w, b) in enumerate(zip(layer_ws, layer_bs)):
        h = h @ w + b
        if li < n_layers - 1:
            h = _silu(h)
    g = x.astype(jnp.float32)
    for li, (w, b) in enumerate(zip(gate_ws, gate_bs)):
        g = g @ w + b
        if li < n_layers - 1:
            g = _silu(g)
        else:
            g = jax.nn.sigmoid(g)
    return (h * g).astype(x.dtype)


# --------------------------------- Main --------------------------------------
if __name__ == "__main__":
    # Module config (small, synthetic):
    #   WeightedReadOut(in_feats=32, dims=(32, 32), num_targets=4)
    #   -> GatedMLP dims = [32, 32, 32, 32, 4]  (4 Linear layers per chain)
    in_feats = 32
    hidden_dims = (32, 32)
    num_targets = 4
    num_nodes = 200   # not a tile multiple -> exercises node padding + slice-back

    full_dims = [in_feats, in_feats, *hidden_dims, num_targets]

    key = jax.random.PRNGKey(0)
    key, xk = jax.random.split(key)
    # g.ndata['node_feat'] equivalent
    x = jax.random.normal(xk, (num_nodes, in_feats), dtype=jnp.float32)

    layer_ws, layer_bs, gate_ws, gate_bs = [], [], [], []
    for din, dout in zip(full_dims[:-1], full_dims[1:]):
        key, k1, k2, k3, k4 = jax.random.split(key, 5)
        scale = 1.0 / np.sqrt(din)
        # weights stored (in, out); biases stored (1, out)
        layer_ws.append(jax.random.uniform(k1, (din, dout), jnp.float32, -scale, scale))
        layer_bs.append(jax.random.uniform(k2, (1, dout), jnp.float32, -scale, scale))
        gate_ws.append(jax.random.uniform(k3, (din, dout), jnp.float32, -scale, scale))
        gate_bs.append(jax.random.uniform(k4, (1, dout), jnp.float32, -scale, scale))

    # Small node_tile here only to exercise the multi-step grid on a tiny test;
    # production default is node_tile=1024.
    out = weighted_readout(x, layer_ws, layer_bs, gate_ws, gate_bs, node_tile=64)
    out = jax.block_until_ready(out)

    ref = weighted_readout_ref(x, layer_ws, layer_bs, gate_ws, gate_bs)
    np.testing.assert_allclose(np.asarray(out), np.asarray(ref), rtol=1e-5, atol=1e-5)

    print("KERNEL_OK")
</pallas_src>

<mosaic_0001>
module attributes {stable_mosaic.version = 11 : i64} {
  func.func @weighted_readout_kernel(%arg0: i32, %arg1: memref<64x32xf32, #tpu.memory_space<vmem>>, %arg2: memref<32x64xf32, #tpu.memory_space<vmem>>, %arg3: memref<1x64xf32, #tpu.memory_space<vmem>>, %arg4: memref<3x64x64xf32, #tpu.memory_space<vmem>>, %arg5: memref<3x1x64xf32, #tpu.memory_space<vmem>>, %arg6: memref<64x4xf32, #tpu.memory_space<vmem>>) attributes {dimension_semantics = [#tpu.dimension_semantics<parallel>], iteration_bounds = array<i64: 4>, scalar_prefetch = 0 : i64, scratch_operands = 0 : i64, tpu.core_type = #tpu.core_type<tc>, window_params = [{transform_indices = @transform_0, window_bounds = array<i64: 64, 32>}, {pipeline_mode = #tpu.pipeline_mode<synchronous>, transform_indices = @transform_1, window_bounds = array<i64: 32, 64>}, {pipeline_mode = #tpu.pipeline_mode<synchronous>, transform_indices = @transform_2, window_bounds = array<i64: 1, 64>}, {pipeline_mode = #tpu.pipeline_mode<synchronous>, transform_indices = @transform_3, window_bounds = array<i64: 3, 64, 64>}, {pipeline_mode = #tpu.pipeline_mode<synchronous>, transform_indices = @transform_4, window_bounds = array<i64: 3, 1, 64>}, {transform_indices = @transform_5, window_bounds = array<i64: 64, 4>}]} {
    %c0 = arith.constant 0 : index
    %c0_0 = arith.constant 0 : index
    %0 = vector.load %arg1[%c0, %c0_0] : memref<64x32xf32, #tpu.memory_space<vmem>>, vector<64x32xf32>
    %c0_1 = arith.constant 0 : index
    %c0_2 = arith.constant 0 : index
    %1 = vector.load %arg2[%c0_1, %c0_2] : memref<32x64xf32, #tpu.memory_space<vmem>>, vector<32x64xf32>
    %cst = arith.constant dense<0.000000e+00> : vector<64x64xf32>
    %2 = tpu.matmul %0, %1, %cst {dimension_numbers = #tpu.dot_dimension_numbers<[1], [0], [0], [1], [0, 0, 1, 1], [], []>} : vector<64x32xf32>, vector<32x64xf32>, vector<64x64xf32> -> vector<64x64xf32>
    %c0_3 = arith.constant 0 : index
    %c0_4 = arith.constant 0 : index
    %3 = vector.load %arg3[%c0_3, %c0_4] : memref<1x64xf32, #tpu.memory_space<vmem>>, vector<1x64xf32>
    %4 = vector.broadcast %3 : vector<1x64xf32> to vector<64x64xf32>
    %5 = arith.addf %2, %4 : vector<64x64xf32>
    %6 = arith.negf %5 : vector<64x64xf32>
    %7 = math.exp %6 : vector<64x64xf32>
    %cst_5 = arith.constant 1.000000e+00 : f32
    %8 = vector.broadcast %cst_5 : f32 to vector<64x64xf32>
    %9 = arith.addf %8, %7 : vector<64x64xf32>
    %10 = arith.divf %8, %9 : vector<64x64xf32>
    %11 = arith.mulf %5, %10 : vector<64x64xf32>
    %c0_6 = arith.constant 0 : index
    %c0_7 = arith.constant 0 : index
    %c0_8 = arith.constant 0 : index
    %12 = vector.load %arg4[%c0_6, %c0_7, %c0_8] : memref<3x64x64xf32, #tpu.memory_space<vmem>>, vector<1x64x64xf32>
    %13 = vector.shape_cast %12 : vector<1x64x64xf32> to vector<64x64xf32>
    %cst_9 = arith.constant dense<0.000000e+00> : vector<64x64xf32>
    %14 = tpu.matmul %11, %13, %cst_9 {dimension_numbers = #tpu.dot_dimension_numbers<[1], [0], [0], [1], [0, 0, 1, 1], [], []>} : vector<64x64xf32>, vector<64x64xf32>, vector<64x64xf32> -> vector<64x64xf32>
    %c0_10 = arith.constant 0 : index
    %c0_11 = arith.constant 0 : index
    %c0_12 = arith.constant 0 : index
    %15 = vector.load %arg5[%c0_10, %c0_11, %c0_12] : memref<3x1x64xf32, #tpu.memory_space<vmem>>, vector<1x1x64xf32>
    %16 = vector.shape_cast %15 : vector<1x1x64xf32> to vector<1x64xf32>
    %17 = vector.broadcast %16 : vector<1x64xf32> to vector<64x64xf32>
    %18 = arith.addf %14, %17 : vector<64x64xf32>
    %19 = arith.negf %18 : vector<64x64xf32>
    %20 = math.exp %19 : vector<64x64xf32>
    %cst_13 = arith.constant 1.000000e+00 : f32
    %21 = vector.broadcast %cst_13 : f32 to vector<64x64xf32>
    %22 = arith.addf %21, %20 : vector<64x64xf32>
    %23 = arith.divf %21, %22 : vector<64x64xf32>
    %24 = arith.mulf %18, %23 : vector<64x64xf32>
    %c1 = arith.constant 1 : index
    %c0_14 = arith.constant 0 : index
    %c0_15 = arith.constant 0 : index
    %25 = vector.load %arg4[%c1, %c0_14, %c0_15] : memref<3x64x64xf32, #tpu.memory_space<vmem>>, vector<1x64x64xf32>
    %26 = vector.shape_cast %25 : vector<1x64x64xf32> to vector<64x64xf32>
    %cst_16 = arith.constant dense<0.000000e+00> : vector<64x64xf32>
    %27 = tpu.matmul %24, %26, %cst_16 {dimension_numbers = #tpu.dot_dimension_numbers<[1], [0], [0], [1], [0, 0, 1, 1], [], []>} : vector<64x64xf32>, vector<64x64xf32>, vector<64x64xf32> -> vector<64x64xf32>
    %c1_17 = arith.constant 1 : index
    %c0_18 = arith.constant 0 : index
    %c0_19 = arith.constant 0 : index
    %28 = vector.load %arg5[%c1_17, %c0_18, %c0_19] : memref<3x1x64xf32, #tpu.memory_space<vmem>>, vector<1x1x64xf32>
    %29 = vector.shape_cast %28 : vector<1x1x64xf32> to vector<1x64xf32>
    %30 = vector.broadcast %29 : vector<1x64xf32> to vector<64x64xf32>
    %31 = arith.addf %27, %30 : vector<64x64xf32>
    %32 = arith.negf %31 : vector<64x64xf32>
    %33 = math.exp %32 : vector<64x64xf32>
    %cst_20 = arith.constant 1.000000e+00 : f32
    %34 = vector.broadcast %cst_20 : f32 to vector<64x64xf32>
    %35 = arith.addf %34, %33 : vector<64x64xf32>
    %36 = arith.divf %34, %35 : vector<64x64xf32>
    %37 = arith.mulf %31, %36 : vector<64x64xf32>
    %c2 = arith.constant 2 : index
    %c0_21 = arith.constant 0 : index
    %c0_22 = arith.constant 0 : index
    %38 = vector.load %arg4[%c2, %c0_21, %c0_22] : memref<3x64x64xf32, #tpu.memory_space<vmem>>, vector<1x64x64xf32>
    %39 = vector.shape_cast %38 : vector<1x64x64xf32> to vector<64x64xf32>
    %cst_23 = arith.constant dense<0.000000e+00> : vector<64x64xf32>
    %40 = tpu.matmul %37, %39, %cst_23 {dimension_numbers = #tpu.dot_dimension_numbers<[1], [0], [0], [1], [0, 0, 1, 1], [], []>} : vector<64x64xf32>, vector<64x64xf32>, vector<64x64xf32> -> vector<64x64xf32>
    %c2_24 = arith.constant 2 : index
    %c0_25 = arith.constant 0 : index
    %c0_26 = arith.constant 0 : index
    %41 = vector.load %arg5[%c2_24, %c0_25, %c0_26] : memref<3x1x64xf32, #tpu.memory_space<vmem>>, vector<1x1x64xf32>
    %42 = vector.shape_cast %41 : vector<1x1x64xf32> to vector<1x64xf32>
    %43 = vector.broadcast %42 : vector<1x64xf32> to vector<64x64xf32>
    %44 = arith.addf %40, %43 : vector<64x64xf32>
    %45 = vector.extract_strided_slice %44 {offsets = [0, 0], sizes = [64, 4], strides = [1, 1]} : vector<64x64xf32> to vector<64x4xf32>
    %46 = vector.extract_strided_slice %44 {offsets = [0, 4], sizes = [64, 4], strides = [1, 1]} : vector<64x64xf32> to vector<64x4xf32>
    %47 = arith.negf %46 : vector<64x4xf32>
    %48 = math.exp %47 : vector<64x4xf32>
    %cst_27 = arith.constant 1.000000e+00 : f32
    %49 = vector.broadcast %cst_27 : f32 to vector<64x4xf32>
    %50 = arith.addf %49, %48 : vector<64x4xf32>
    %51 = arith.divf %49, %50 : vector<64x4xf32>
    %52 = arith.mulf %45, %51 : vector<64x4xf32>
    %c0_28 = arith.constant 0 : index
    %c0_29 = arith.constant 0 : index
    %53 = vector.load %arg6[%c0_28, %c0_29] : memref<64x4xf32, #tpu.memory_space<vmem>>, vector<64x4xf32>
    tpu.vector_store %arg6[%c0_28, %c0_29], %52 {strides = array<i32>} : memref<64x4xf32, #tpu.memory_space<vmem>>, vector<64x4xf32>,
    return
  }
  func.func @transform_0(%arg0: i32) -> (i32, i32) {
    %c0_i32 = arith.constant 0 : i32
    %c0_i32_0 = arith.constant 0 : i32
    return %arg0, %c0_i32 : i32, i32
  }
  func.func @transform_1(%arg0: i32) -> (i32, i32) {
    %c0_i32 = arith.constant 0 : i32
    %c0_i32_0 = arith.constant 0 : i32
    %c0_i32_1 = arith.constant 0 : i32
    return %c0_i32, %c0_i32_0 : i32, i32
  }
  func.func @transform_2(%arg0: i32) -> (i32, i32) {
    %c0_i32 = arith.constant 0 : i32
    %c0_i32_0 = arith.constant 0 : i32
    %c0_i32_1 = arith.constant 0 : i32
    return %c0_i32, %c0_i32_0 : i32, i32
  }
  func.func @transform_3(%arg0: i32) -> (i32, i32, i32) {
    %c0_i32 = arith.constant 0 : i32
    %c0_i32_0 = arith.constant 0 : i32
    %c0_i32_1 = arith.constant 0 : i32
    %c0_i32_2 = arith.constant 0 : i32
    return %c0_i32, %c0_i32_0, %c0_i32_1 : i32, i32, i32
  }
  func.func @transform_4(%arg0: i32) -> (i32, i32, i32) {
    %c0_i32 = arith.constant 0 : i32
    %c0_i32_0 = arith.constant 0 : i32
    %c0_i32_1 = arith.constant 0 : i32
    %c0_i32_2 = arith.constant 0 : i32
    return %c0_i32, %c0_i32_0, %c0_i32_1 : i32, i32, i32
  }
  func.func @transform_5(%arg0: i32) -> (i32, i32) {
    %c0_i32 = arith.constant 0 : i32
    %c0_i32_0 = arith.constant 0 : i32
    return %arg0, %c0_i32 : i32, i32
  }
}

</mosaic_0001>

<bundles_post_ra>
// kernel: tpu_custom_call.1
= control target key start
LH: loop header
LB: loop body
LE: loop exit
PB: predicated region body
PF: predicated region fallthrough
CT: control target
= control target key end

     0   :  { %s1556_s18 = smov 0   ;;  %s1868_s0 = inlined_call_operand.vmem [shape: f32[256,32], index: 0, kind: input, shape index: {}]   ;;  %s1869_s1 = inlined_call_operand.vmem [shape: f32[32,64], index: 1, kind: input, shape index: {}]   ;;  %s1870_s2 = inlined_call_operand.vmem [shape: f32[1,64], index: 2, kind: input, shape index: {}]   ;;  %s1871_s3 = inlined_call_operand.vmem [shape: f32[3,64,64], index: 3, kind: input, shape index: {}]   ;;  %s1872_s4 = inlined_call_operand.vmem [shape: f32[3,1,64], index: 4, kind: input, shape index: {}]   ;;  %s1873_s5 = inlined_call_operand.vmem [shape: f32[256,4], index: 5, kind: output, shape index: {}]  }
   0x1 LB: > { %s1283_s19 = sadd.s32 4294967295, %s1523_s18   ;;  %p1287_p0 = scmp.ge.s32.totalorder %s1523_s18, 1  ;;  %s1523_s18 = sphi %s1556_s18, %s15_s18  }
   0x2   : > { %p188_p1 = scmp.lt.s32.totalorder %s1523_s18, 5 }
   0x4   : > { %p189_p2 = pnand %p1287_p0, %p188_p1 }
   0x5   : > { %s1288_s24 = sshll.u32 (!%p189_p2), %s1283_s19, 3  ;;  %s1525_s21 = smov (!%p189_p2), 124  }
   0x6   : > { %192 = sbr.rel (%p189_p2) target bundleno = 835 (0x343), region = 40  ;;  %p217_p3 = scmp.lt.s32.totalorder (!%p189_p2), %s1288_s24, 31 }
   0xb   : > { %v239_v0 = vld [vmem:[%s1869_s1 + $0x18] sm:$0xff]  ;;  %v238_v1 = vld [vmem:[%s1869_s1 + $0x10] sm:$0xff]  ;;  %v237_v2 = vld [vmem:[%s1869_s1 + $0x8] sm:$0xff]  ;;  %s1875_s24 = smov (!%p217_p3, %s1288_s24), 31  ;;  %vm244_vm0 = vcmask 261120   ;;  %vm482_vm5 = vcmask 523264  }
   0xc   : > { %281 = vmatpush.msra.mxu0 %v239_v0  ;;  %v236_v3 = vld [vmem:[%s1869_s1] sm:$0xff]  ;;  %s1289_s29 = sshll.u32 %s1875_s24, 3  ;;  %v477_v12 = vld [vmem:[%s1871_s3 + $0x38] sm:$0xff]  ;;  %v476_v13 = vld [vmem:[%s1871_s3 + $0x30] sm:$0xff] }
   0xd   : > { %s220_s7 = scalar_lea.vmem %s1868_s0, %s1289_s29  ;;  %515 = vmatpush.msra.mxu1 %v477_v12  ;;  %v475_v14 = vld [vmem:[%s1871_s3 + $0x28] sm:$0xff]  ;;  %v474_v15 = vld [vmem:[%s1871_s3 + $0x20] sm:$0xff]  ;;  %v473_v16 = vld [vmem:[%s1871_s3 + $0x18] sm:$0xff]  ;;  %s226_s25 = scalar_lea.vmem %s1873_s5, %s1289_s29 }
   0xe   : > { %282 = vmatpush.msra.mxu0 %v238_v1  ;;  %v228_v4 = vld [vmem:[%s220_s7] sm:$0xff]  ;;  %v229_v5 = vld [vmem:[%s220_s7 + $0x8] sm:$0xff]  ;;  %v230_v6 = vld [vmem:[%s220_s7 + $0x10] sm:$0xff] }
   0xf   : > { %v231_v7 = vld [vmem:[%s220_s7 + $0x18] sm:$0xff]  ;;  %v232_v8 = vld [vmem:[%s220_s7 + $0x20] sm:$0xff]  ;;  %v233_v9 = vld [vmem:[%s220_s7 + $0x28] sm:$0xff]  ;;  %516 = vmatpush.msra.mxu1 %v476_v13 }
  0x10   : > { %283 = vmatpush.msra.mxu0 %v237_v2  ;;  %v234_v10 = vld [vmem:[%s220_s7 + $0x30] sm:$0xff]  ;;  %v235_v11 = vld [vmem:[%s220_s7 + $0x38] sm:$0xff]  ;;  %v1613_v18 = vld [vmem:[%s1870_s2] ss:$0 sm:$0xff] }
  0x11   : > { %517 = vmatpush.msra.mxu1 %v475_v14  ;;  %v472_v17 = vld [vmem:[%s1871_s3 + $0x10] sm:$0xff]  ;;  %v471_v19 = vld [vmem:[%s1871_s3 + $0x8] sm:$0xff]  ;;  %v470_v21 = vld [vmem:[%s1871_s3] sm:$0xff] }
  0x12   : > { %284 = vmatpush.msra.mxu0 %v236_v3 }
  0x13   : > { %1292 = vmatmul.msk.f32.vlgmr.msra.gmra.mxu0 %vm244_vm0, %v228_v4  ;;  %518 = vmatpush.msra.mxu1 %v474_v15 }
  0x15   : > { %519 = vmatpush.msra.mxu1 %v473_v16 }
  0x17   : > { %520 = vmatpush.msra.mxu1 %v472_v17 }
  0x19   : > { %521 = vmatpush.msra.mxu1 %v471_v19 }
  0x1b   : > { %1293 = vmatmul.msk.f32.gmra.mxu0 %vm244_vm0, %v229_v5  ;;  %522 = vmatpush.msra.mxu1 %v470_v21 }
  0x23   : > { %1294 = vmatmul.msk.f32.gmra.mxu0 %vm244_vm0, %v230_v6 }
  0x2b   : > { %1295 = vmatmul.msk.f32.gmra.mxu0 %vm244_vm0, %v231_v7 }
  0x33   : > { %1296 = vmatmul.msk.f32.gmra.mxu0 %vm244_vm0, %v232_v8 }
  0x3b   : > { %1297 = vmatmul.msk.f32.gmra.mxu0 %vm244_vm0, %v233_v9 }
  0x43   : > { %1298 = vmatmul.msk.f32.gmra.mxu0 %vm244_vm0, %v234_v10 }
  0x4b   : > { %1299 = vmatmul.msk.f32.gmra.mxu0 %vm244_vm0, %v235_v11 }
  0x90   : > { %v286_v20 = vpop.f32.mrf.mxu0 }
  0x91   : > { %v287_v22 = vadd.f32 %v1613_v18, %v286_v20 }
  0x93   : > { %v1300_v23 = vmul.f32 -1.442695, %v287_v22 }
  0x95   : > { %1389 = vpow2.f32 %v1300_v23 }
  0x98   : > { %v289_v24 = vpop.f32.mrf.mxu0 }
  0x99   : > { %v290_v25 = vadd.f32 %v1613_v18, %v289_v24 }
  0x9b   : > { %v1390_v26 = vpop.eup %1389  ;;  %v1301_v27 = vmul.f32 -1.442695, %v290_v25 }
  0x9c   : > { %v334_v28 = vadd.f32 1.0, %v1390_v26 }
  0x9d   : > { %1391 = vpow2.f32 %v1301_v27 }
  0x9e   : > { %1393 = vrcp.f32 %v334_v28  ;;  %v353_v37 = vand.u32 2147483648, %v334_v28  ;;  %v351_v40 = vand.u32 2147483647, %v334_v28  ;;  %vm347_vm2 = vweird.f32 %v334_v28 }
  0xa0   : > { %v292_v29 = vpop.f32.mrf.mxu0  ;;  %v354_v46 = vor.u32 1.1754944e-38, %v353_v37  ;;  %vm352_vm4 = vcmp.eq.f32.partialorder %v351_v40, 8.507059e+37 }
  0xa1   : > { %v1624_v30 = vadd.f32 %v1613_v18, %v292_v29 }
  0xa3   : > { %v1392_v31 = vpop.eup %1391  ;;  %v1302_v32 = vmul.f32 -1.442695, %v1624_v30 }
  0xa4   : > { %v1394_v33 = vpop.eup %1393  ;;  %v335_v34 = vadd.f32 1.0, %v1392_v31 }
  0xa5   : > { %v343_v35 = vmul.f32 %v1394_v33, %v334_v28  ;;  %1395 = vpow2.f32 %v1302_v32  ;;  %vm348_vm1 = vweird.f32 %v1394_v33 }
  0xa6   : > { %1397 = vrcp.f32 %v335_v34  ;;  %vm349_vm3 = vmor %vm347_vm2, %vm348_vm1  ;;  %v368_v53 = vand.u32 2147483648, %v335_v34  ;;  %v366_v56 = vand.u32 2147483647, %v335_v34  ;;  %vm362_vm7 = vweird.f32 %v335_v34 }
  0xa7   : > { %v344_v36 = vsub.f32 1.0, %v343_v35 }
  0xa8   : > { %v295_v38 = vpop.f32.mrf.mxu0  ;;  %v369_v62 = vor.u32 1.1754944e-38, %v368_v53  ;;  %vm367_vm9 = vcmp.eq.f32.partialorder %v366_v56, 8.507059e+37 }
  0xa9   : > { %v345_v39 = vmul.f32 %v1394_v33, %v344_v36  ;;  %v1628_v41 = vadd.f32 %v1613_v18, %v295_v38 }
  0xab   : > { %v1396_v42 = vpop.eup %1395  ;;  %v346_v43 = vadd.f32 %v1394_v33, %v345_v39  ;;  %v1303_v44 = vmul.f32 -1.442695, %v1628_v41 }
  0xac   : > { %v1398_v45 = vpop.eup %1397  ;;  %v336_v47 = vadd.f32 1.0, %v1396_v42 }
  0xad   : > { %v350_v48 = vsel %vm349_vm3, %v1394_v33, %v346_v43  ;;  %v358_v49 = vmul.f32 %v1398_v45, %v335_v34  ;;  %1399 = vpow2.f32 %v1303_v44  ;;  %vm363_vm6 = vweird.f32 %v1398_v45 }
  0xae   : > { %v355_v50 = vsel %vm352_vm4, %v354_v46, %v350_v48  ;;  %1401 = vrcp.f32 %v336_v47  ;;  %vm364_vm8 = vmor %vm362_vm7, %vm363_vm6  ;;  %v383_v5 = vand.u32 2147483648, %v336_v47  ;;  %v381_v8 = vand.u32 2147483647, %v336_v47 }
  0xaf   : > { %v462_v51 = vmul.f32 %v355_v50, %v287_v22  ;;  %v359_v52 = vsub.f32 1.0, %v358_v49  ;;  %vm377_vm11 = vweird.f32 %v336_v47 }
  0xb0   : > { %v298_v54 = vpop.f32.mrf.mxu0  ;;  %v384_v14 = vor.u32 1.1754944e-38, %v383_v5  ;;  %vm382_vm13 = vcmp.eq.f32.partialorder %v381_v8, 8.507059e+37 }
  0xb1   : > { %v360_v55 = vmul.f32 %v1398_v45, %v359_v52  ;;  %v1632_v57 = vadd.f32 %v1613_v18, %v298_v54  ;;  %1308 = vmatmul.msk.f32.vlgmr.msra.gmra.mxu1 %vm482_vm5, %v462_v51 }
  0xb3   : > { %v1400_v58 = vpop.eup %1399  ;;  %v361_v59 = vadd.f32 %v1398_v45, %v360_v55  ;;  %v1304_v60 = vmul.f32 -1.442695, %v1632_v57 }
  0xb4   : > { %v1402_v61 = vpop.eup %1401  ;;  %v337_v63 = vadd.f32 1.0, %v1400_v58 }
  0xb5   : > { %v365_v0 = vsel %vm364_vm8, %v1398_v45, %v361_v59  ;;  %v373_v1 = vmul.f32 %v1402_v61, %v336_v47  ;;  %1403 = vpow2.f32 %v1304_v60  ;;  %vm378_vm10 = vweird.f32 %v1402_v61 }
  0xb6   : > { %v370_v2 = vsel %vm367_vm9, %v369_v62, %v365_v0  ;;  %1405 = vrcp.f32 %v337_v63  ;;  %vm379_vm12 = vmor %vm377_vm11, %vm378_vm10  ;;  %v398_v22 = vand.u32 2147483648, %v337_v63  ;;  %vm392_vm15 = vweird.f32 %v337_v63 }
  0xb7   : > { %v463_v3 = vmul.f32 %v370_v2, %v290_v25  ;;  %v374_v4 = vsub.f32 1.0, %v373_v1  ;;  %v396_v25 = vand.u32 2147483647, %v337_v63 }
  0xb8   : > { %v301_v6 = vpop.f32.mrf.mxu0  ;;  %v399_v32 = vor.u32 1.1754944e-38, %v398_v22  ;;  %v1331_v22 = vld [vmem:[%s1871_s3 + $0x78] sm:$0xff] }
  0xb9   : > { %v375_v7 = vmul.f32 %v1402_v61, %v374_v4  ;;  %v1637_v9 = vadd.f32 %v1613_v18, %v301_v6  ;;  %1309 = vmatmul.msk.f32.gmra.mxu1 %vm482_vm5, %v463_v3  ;;  %vm397_vm1 = vcmp.eq.f32.partialorder %v396_v25, 8.507059e+37  ;;  %754 = vmatpush.msra.mxu2 %v1331_v22  ;;  %v1328_v25 = vld [vmem:[%s1871_s3 + $0x60] sm:$0xff] }
  0xbb   : > { %v1404_v10 = vpop.eup %1403  ;;  %v376_v11 = vadd.f32 %v1402_v61, %v375_v7  ;;  %v1305_v12 = vmul.f32 -1.442695, %v1637_v9 }
  0xbc   : > { %v1406_v13 = vpop.eup %1405  ;;  %v338_v15 = vadd.f32 1.0, %v1404_v10 }
  0xbd   : > { %v380_v16 = vsel %vm379_vm12, %v1402_v61, %v376_v11  ;;  %v388_v17 = vmul.f32 %v1406_v13, %v337_v63  ;;  %1407 = vpow2.f32 %v1305_v12  ;;  %vm393_vm14 = vweird.f32 %v1406_v13 }
  0xbe   : > { %v385_v19 = vsel %vm382_vm13, %v384_v14, %v380_v16  ;;  %1409 = vrcp.f32 %v338_v15  ;;  %vm394_vm0 = vmor %vm392_vm15, %vm393_vm14  ;;  %v413_v38 = vand.u32 2147483648, %v338_v15  ;;  %v411_v42 = vand.u32 2147483647, %v338_v15 }
  0xbf   : > { %v464_v20 = vmul.f32 %v385_v19, %v1624_v30  ;;  %v389_v21 = vsub.f32 1.0, %v388_v17  ;;  %vm407_vm3 = vweird.f32 %v338_v15 }
  0xc0   : > { %v304_v23 = vpop.f32.mrf.mxu0  ;;  %v414_v48 = vor.u32 1.1754944e-38, %v413_v38  ;;  %vm412_vm6 = vcmp.eq.f32.partialorder %v411_v42, 8.507059e+37 }
  0xc1   : > { %v390_v24 = vmul.f32 %v1406_v13, %v389_v21  ;;  %v1643_v26 = vadd.f32 %v1613_v18, %v304_v23  ;;  %1310 = vmatmul.msk.f32.gmra.mxu1 %vm482_vm5, %v464_v20  ;;  %v1330_v23 = vld [vmem:[%s1871_s3 + $0x70] sm:$0xff] }
  0xc2   : > { %755 = vmatpush.msra.mxu2 %v1330_v23 }
  0xc3   : > { %v1408_v27 = vpop.eup %1407  ;;  %v391_v28 = vadd.f32 %v1406_v13, %v390_v24  ;;  %v1306_v29 = vmul.f32 -1.442695, %v1643_v26  ;;  %v1329_v24 = vld [vmem:[%s1871_s3 + $0x68] sm:$0xff] }
  0xc4   : > { %v1410_v31 = vpop.eup %1409  ;;  %v339_v30 = vadd.f32 1.0, %v1408_v27  ;;  %756 = vmatpush.msra.mxu2 %v1329_v24  ;;  %v1326_v27 = vld [vmem:[%s1871_s3 + $0x50] sm:$0xff] }
  0xc5   : > { %v395_v33 = vsel %vm394_vm0, %v1406_v13, %v391_v28  ;;  %v403_v34 = vmul.f32 %v1410_v31, %v338_v15  ;;  %1411 = vpow2.f32 %v1306_v29  ;;  %vm408_vm2 = vweird.f32 %v1410_v31  ;;  %v1682_v28 = vld [vmem:[%s1872_s4] ss:$0 sm:$0xff]  ;;  %v1325_v29 = vld [vmem:[%s1871_s3 + $0x48] sm:$0xff] }
  0xc6   : > { %v400_v35 = vsel %vm397_vm1, %v399_v32, %v395_v33  ;;  %1413 = vrcp.f32 %v339_v30  ;;  %vm409_vm4 = vmor %vm407_vm3, %vm408_vm2  ;;  %v428_v53 = vand.u32 2147483648, %v339_v30  ;;  %v426_v55 = vand.u32 2147483647, %v339_v30  ;;  %757 = vmatpush.msra.mxu2 %v1328_v25  ;;  %v1324_v32 = vld [vmem:[%s1871_s3 + $0x40] sm:$0xff] }
  0xc7   : > { %v465_v36 = vmul.f32 %v400_v35, %v1628_v41  ;;  %v404_v37 = vsub.f32 1.0, %v403_v34  ;;  %vm422_vm8 = vweird.f32 %v339_v30 }
  0xc8   : > { %v307_v39 = vpop.f32.mrf.mxu0  ;;  %v429_v60 = vor.u32 1.1754944e-38, %v428_v53  ;;  %vm427_vm10 = vcmp.eq.f32.partialorder %v426_v55, 8.507059e+37 }
  0xc9   : > { %v405_v40 = vmul.f32 %v1410_v31, %v404_v37  ;;  %v1649_v43 = vadd.f32 %v1613_v18, %v307_v39  ;;  %1311 = vmatmul.msk.f32.gmra.mxu1 %vm482_vm5, %v465_v36 }
  0xcb   : > { %v1412_v44 = vpop.eup %1411  ;;  %v406_v45 = vadd.f32 %v1410_v31, %v405_v40  ;;  %v1307_v46 = vmul.f32 -1.442695, %v1649_v43 }
  0xcc   : > { %v1414_v47 = vpop.eup %1413  ;;  %v340_v41 = vadd.f32 1.0, %v1412_v44 }
  0xcd   : > { %v410_v49 = vsel %vm409_vm4, %v1410_v31, %v406_v45  ;;  %v418_v50 = vmul.f32 %v1414_v47, %v339_v30  ;;  %1415 = vpow2.f32 %v1307_v46  ;;  %vm423_vm7 = vweird.f32 %v1414_v47 }
  0xce   : > { %v415_v51 = vsel %vm412_vm6, %v414_v48, %v410_v49  ;;  %1417 = vrcp.f32 %v340_v41  ;;  %vm424_vm9 = vmor %vm422_vm8, %vm423_vm7  ;;  %v443_v2 = vand.u32 2147483648, %v340_v41  ;;  %v441_v4 = vand.u32 2147483647, %v340_v41 }
  0xcf   : > { %v466_v18 = vmul.f32 %v415_v51, %v1632_v57  ;;  %v419_v52 = vsub.f32 1.0, %v418_v50  ;;  %vm437_vm12 = vweird.f32 %v340_v41 }
  0xd0   : > { %v444_v7 = vor.u32 1.1754944e-38, %v443_v2  ;;  %vm442_vm14 = vcmp.eq.f32.partialorder %v441_v4, 8.507059e+37 }
  0xd1   : > { %v420_v54 = vmul.f32 %v1414_v47, %v419_v52  ;;  %1312 = vmatmul.msk.f32.gmra.mxu1 %vm482_vm5, %v466_v18 }
  0xd3   : > { %v1416_v56 = vpop.eup %1415  ;;  %v421_v58 = vadd.f32 %v1414_v47, %v420_v54 }
  0xd4   : > { %v1418_v59 = vpop.eup %1417  ;;  %v341_v61 = vadd.f32 1.0, %v1416_v56 }
  0xd5   : > { %v425_v62 = vsel %vm424_vm9, %v1414_v47, %v421_v58  ;;  %v433_v63 = vmul.f32 %v1418_v59, %v340_v41  ;;  %vm438_vm11 = vweird.f32 %v1418_v59 }
  0xd6   : > { %v430_v0 = vsel %vm427_vm10, %v429_v60, %v425_v62  ;;  %1419 = vrcp.f32 %v341_v61  ;;  %vm439_vm13 = vmor %vm437_vm12, %vm438_vm11  ;;  %v456_v15 = vand.u32 2147483647, %v341_v61  ;;  %vm452_vm0 = vweird.f32 %v341_v61 }
  0xd7   : > { %v467_v57 = vmul.f32 %v430_v0, %v1637_v9  ;;  %v434_v1 = vsub.f32 1.0, %v433_v63  ;;  %v458_v9 = vand.u32 2147483648, %v341_v61 }
  0xd8   : > { %vm457_vm2 = vcmp.eq.f32.partialorder %v456_v15, 8.507059e+37 }
  0xd9   : > { %v435_v3 = vmul.f32 %v1418_v59, %v434_v1  ;;  %1313 = vmatmul.msk.f32.gmra.mxu1 %vm482_vm5, %v467_v57  ;;  %v459_v17 = vor.u32 1.1754944e-38, %v458_v9 }
  0xdb   : > { %v436_v5 = vadd.f32 %v1418_v59, %v435_v3 }
  0xdc   : > { %v1420_v6 = vpop.eup %1419 }
  0xdd   : > { %v440_v8 = vsel %vm439_vm13, %v1418_v59, %v436_v5  ;;  %v448_v10 = vmul.f32 %v1420_v6, %v341_v61  ;;  %vm453_vm15 = vweird.f32 %v1420_v6 }
  0xde   : > { %v445_v11 = vsel %vm442_vm14, %v444_v7, %v440_v8  ;;  %vm454_vm1 = vmor %vm452_vm0, %vm453_vm15 }
  0xdf   : > { %v468_v12 = vmul.f32 %v445_v11, %v1643_v26  ;;  %v449_v13 = vsub.f32 1.0, %v448_v10  ;;  %v1327_v26 = vld [vmem:[%s1871_s3 + $0x58] sm:$0xff] }
  0xe0   : > { %758 = vmatpush.msra.mxu2 %v1327_v26 }
  0xe1   : > { %v450_v14 = vmul.f32 %v1420_v6, %v449_v13  ;;  %1314 = vmatmul.msk.f32.gmra.mxu1 %vm482_vm5, %v468_v12 }
  0xe2   : > { %759 = vmatpush.msra.mxu2 %v1326_v27 }
  0xe3   : > { %v451_v16 = vadd.f32 %v1420_v6, %v450_v14 }
  0xe4   : > { %760 = vmatpush.msra.mxu2 %v1325_v29 }
  0xe5   : > { %v455_v19 = vsel %vm454_vm1, %v1420_v6, %v451_v16 }
  0xe6   : > { %v460_v20 = vsel %vm457_vm2, %v459_v17, %v455_v19  ;;  %761 = vmatpush.msra.mxu2 %v1324_v32 }
  0xe7   : > { %v469_v21 = vmul.f32 %v460_v20, %v1649_v43 }
  0xe9   : > { %1315 = vmatmul.msk.f32.gmra.mxu1 %vm482_vm5, %v469_v21 }
 0x12e   : > { %v524_v31 = vpop.f32.mrf.mxu1 }
 0x12f   : > { %v525_v30 = vadd.f32 %v1682_v28, %v524_v31 }
 0x131   : > { %v1316_v33 = vmul.f32 -1.442695, %v525_v30 }
 0x133   : > { %1421 = vpow2.f32 %v1316_v33 }
 0x136   : > { %v527_v34 = vpop.f32.mrf.mxu1 }
 0x137   : > { %v528_v35 = vadd.f32 %v1682_v28, %v527_v34 }
 0x139   : > { %v1422_v36 = vpop.eup %1421  ;;  %v1317_v37 = vmul.f32 -1.442695, %v528_v35 }
 0x13a   : > { %v572_v38 = vadd.f32 1.0, %v1422_v36 }
 0x13b   : > { %1423 = vpow2.f32 %v1317_v37 }
 0x13c   : > { %1425 = vrcp.f32 %v572_v38  ;;  %v591_v48 = vand.u32 2147483648, %v572_v38  ;;  %v589_v50 = vand.u32 2147483647, %v572_v38  ;;  %vm585_vm4 = vweird.f32 %v572_v38 }
 0x13e   : > { %v530_v39 = vpop.f32.mrf.mxu1  ;;  %v592_v55 = vor.u32 1.1754944e-38, %v591_v48  ;;  %vm590_vm7 = vcmp.eq.f32.partialorder %v589_v50, 8.507059e+37 }
 0x13f   : > { %v1693_v40 = vadd.f32 %v1682_v28, %v530_v39 }
 0x141   : > { %v1424_v42 = vpop.eup %1423  ;;  %v1318_v43 = vmul.f32 -1.442695, %v1693_v40 }
 0x142   : > { %v1426_v44 = vpop.eup %1425  ;;  %v573_v45 = vadd.f32 1.0, %v1424_v42 }
 0x143   : > { %v581_v46 = vmul.f32 %v1426_v44, %v572_v38  ;;  %1427 = vpow2.f32 %v1318_v43  ;;  %vm586_vm3 = vweird.f32 %v1426_v44 }
 0x144   : > { %1429 = vrcp.f32 %v573_v45  ;;  %vm587_vm6 = vmor %vm585_vm4, %vm586_vm3  ;;  %v606_v63 = vand.u32 2147483648, %v573_v45  ;;  %v604_v1 = vand.u32 2147483647, %v573_v45  ;;  %vm600_vm9 = vweird.f32 %v573_v45 }
 0x145   : > { %v582_v47 = vsub.f32 1.0, %v581_v46 }
 0x146   : > { %v533_v41 = vpop.f32.mrf.mxu1  ;;  %v607_v7 = vor.u32 1.1754944e-38, %v606_v63  ;;  %vm605_vm11 = vcmp.eq.f32.partialorder %v604_v1, 8.507059e+37 }
 0x147   : > { %v583_v49 = vmul.f32 %v1426_v44, %v582_v47  ;;  %v1697_v51 = vadd.f32 %v1682_v28, %v533_v41 }
 0x149   : > { %v1428_v18 = vpop.eup %1427  ;;  %v584_v52 = vadd.f32 %v1426_v44, %v583_v49  ;;  %v1319_v53 = vmul.f32 -1.442695, %v1697_v51 }
 0x14a   : > { %v1430_v54 = vpop.eup %1429  ;;  %v574_v56 = vadd.f32 1.0, %v1428_v18 }
 0x14b   : > { %v588_v58 = vsel %vm587_vm6, %v1426_v44, %v584_v52  ;;  %v596_v59 = vmul.f32 %v1430_v54, %v573_v45  ;;  %1431 = vpow2.f32 %v1319_v53  ;;  %vm601_vm8 = vweird.f32 %v1430_v54 }
 0x14c   : > { %v593_v60 = vsel %vm590_vm7, %v592_v55, %v588_v58  ;;  %1433 = vrcp.f32 %v574_v56  ;;  %vm602_vm10 = vmor %vm600_vm9, %vm601_vm8  ;;  %v621_v14 = vand.u32 2147483648, %v574_v56  ;;  %v619_v17 = vand.u32 2147483647, %v574_v56 }
 0x14d   : > { %v700_v61 = vmul.f32 %v593_v60, %v525_v30  ;;  %v597_v62 = vsub.f32 1.0, %v596_v59  ;;  %vm615_vm13 = vweird.f32 %v574_v56 }
 0x14e   : > { %v536_v0 = vpop.f32.mrf.mxu1  ;;  %v622_v24 = vor.u32 1.1754944e-38, %v621_v14  ;;  %vm620_vm15 = vcmp.eq.f32.partialorder %v619_v17, 8.507059e+37 }
 0x14f   : > { %v598_v57 = vmul.f32 %v1430_v54, %v597_v62  ;;  %v1701_v2 = vadd.f32 %v1682_v28, %v536_v0  ;;  %1333 = vmatmul.msk.f32.vlgmr.msra.gmra.mxu2 %vm482_vm5, %v700_v61 }
 0x151   : > { %v1432_v3 = vpop.eup %1431  ;;  %v599_v4 = vadd.f32 %v1430_v54, %v598_v57  ;;  %v1320_v5 = vmul.f32 -1.442695, %v1701_v2 }
 0x152   : > { %v1434_v6 = vpop.eup %1433  ;;  %v575_v8 = vadd.f32 1.0, %v1432_v3 }
 0x153   : > { %v603_v10 = vsel %vm602_vm10, %v1430_v54, %v599_v4  ;;  %v611_v11 = vmul.f32 %v1434_v6, %v574_v56  ;;  %1435 = vpow2.f32 %v1320_v5  ;;  %vm616_vm12 = vweird.f32 %v1434_v6 }
 0x154   : > { %v608_v12 = vsel %vm605_vm11, %v607_v7, %v603_v10  ;;  %1437 = vrcp.f32 %v575_v8  ;;  %vm617_vm14 = vmor %vm615_vm13, %vm616_vm12  ;;  %v636_v30 = vand.u32 2147483648, %v575_v8  ;;  %vm630_vm1 = vweird.f32 %v575_v8 }
 0x155   : > { %v701_v13 = vmul.f32 %v608_v12, %v528_v35  ;;  %v612_v9 = vsub.f32 1.0, %v611_v11  ;;  %v634_v35 = vand.u32 2147483647, %v575_v8 }
 0x156   : > { %v539_v15 = vpop.f32.mrf.mxu1  ;;  %v637_v43 = vor.u32 1.1754944e-38, %v636_v30  ;;  %v1356_v30 = vld [vmem:[%s1871_s3 + $0xb8] sm:$0xff] }
 0x157   : > { %v613_v16 = vmul.f32 %v1434_v6, %v612_v9  ;;  %v1706_v19 = vadd.f32 %v1682_v28, %v539_v15  ;;  %1334 = vmatmul.msk.f32.gmra.mxu2 %vm482_vm5, %v701_v13  ;;  %vm635_vm3 = vcmp.eq.f32.partialorder %v634_v35, 8.507059e+37  ;;  %993 = vmatpush.msra.mxu3 %v1356_v30  ;;  %v1353_v35 = vld [vmem:[%s1871_s3 + $0xa0] sm:$0xff] }
 0x159   : > { %v1436_v20 = vpop.eup %1435  ;;  %v614_v21 = vadd.f32 %v1434_v6, %v613_v16  ;;  %v1321_v22 = vmul.f32 -1.442695, %v1706_v19 }
 0x15a   : > { %v1438_v23 = vpop.eup %1437  ;;  %v576_v25 = vadd.f32 1.0, %v1436_v20 }
 0x15b   : > { %v618_v26 = vsel %vm617_vm14, %v1434_v6, %v614_v21  ;;  %v626_v27 = vmul.f32 %v1438_v23, %v575_v8  ;;  %1439 = vpow2.f32 %v1321_v22  ;;  %vm631_vm0 = vweird.f32 %v1438_v23 }
 0x15c   : > { %v623_v29 = vsel %vm620_vm15, %v622_v24, %v618_v26  ;;  %1441 = vrcp.f32 %v576_v25  ;;  %vm632_vm2 = vmor %vm630_vm1, %vm631_vm0  ;;  %v651_v41 = vand.u32 2147483648, %v576_v25  ;;  %v649_v18 = vand.u32 2147483647, %v576_v25 }
 0x15d   : > { %v702_v31 = vmul.f32 %v623_v29, %v1693_v40  ;;  %v627_v32 = vsub.f32 1.0, %v626_v27  ;;  %vm645_vm6 = vweird.f32 %v576_v25 }
 0x15e   : > { %v542_v33 = vpop.f32.mrf.mxu1  ;;  %v652_v58 = vor.u32 1.1754944e-38, %v651_v41  ;;  %vm650_vm8 = vcmp.eq.f32.partialorder %v649_v18, 8.507059e+37 }
 0x15f   : > { %v628_v34 = vmul.f32 %v1438_v23, %v627_v32  ;;  %v1712_v36 = vadd.f32 %v1682_v28, %v542_v33  ;;  %1335 = vmatmul.msk.f32.gmra.mxu2 %vm482_vm5, %v702_v31  ;;  %v1355_v33 = vld [vmem:[%s1871_s3 + $0xb0] sm:$0xff] }
 0x160   : > { %994 = vmatpush.msra.mxu3 %v1355_v33 }
 0x161   : > { %v1440_v37 = vpop.eup %1439  ;;  %v629_v38 = vadd.f32 %v1438_v23, %v628_v34  ;;  %v1322_v39 = vmul.f32 -1.442695, %v1712_v36  ;;  %v1354_v34 = vld [vmem:[%s1871_s3 + $0xa8] sm:$0xff] }
 0x162   : > { %v1442_v42 = vpop.eup %1441  ;;  %v577_v40 = vadd.f32 1.0, %v1440_v37  ;;  %995 = vmatpush.msra.mxu3 %v1354_v34  ;;  %v1351_v37 = vld [vmem:[%s1871_s3 + $0x90] sm:$0xff] }
 0x163   : > { %v633_v44 = vsel %vm632_vm2, %v1438_v23, %v629_v38  ;;  %v641_v45 = vmul.f32 %v1442_v42, %v576_v25  ;;  %1443 = vpow2.f32 %v1322_v39  ;;  %vm646_vm4 = vweird.f32 %v1442_v42  ;;  %v1751_v38 = vld [vmem:[%s1872_s4 + $0x1] ss:$0 sm:$0xff]  ;;  %v1350_v39 = vld [vmem:[%s1871_s3 + $0x88] sm:$0xff] }
 0x164   : > { %v638_v46 = vsel %vm635_vm3, %v637_v43, %v633_v44  ;;  %1445 = vrcp.f32 %v577_v40  ;;  %vm647_vm7 = vmor %vm645_vm6, %vm646_vm4  ;;  %v666_v63 = vand.u32 2147483648, %v577_v40  ;;  %v664_v57 = vand.u32 2147483647, %v577_v40  ;;  %996 = vmatpush.msra.mxu3 %v1353_v35  ;;  %v1349_v43 = vld [vmem:[%s1871_s3 + $0x80] sm:$0xff] }
 0x165   : > { %v703_v47 = vmul.f32 %v638_v46, %v1697_v51  ;;  %v642_v48 = vsub.f32 1.0, %v641_v45  ;;  %vm660_vm10 = vweird.f32 %v577_v40 }
 0x166   : > { %v545_v49 = vpop.f32.mrf.mxu1  ;;  %v667_v5 = vor.u32 1.1754944e-38, %v666_v63  ;;  %vm665_vm12 = vcmp.eq.f32.partialorder %v664_v57, 8.507059e+37 }
 0x167   : > { %v643_v50 = vmul.f32 %v1442_v42, %v642_v48  ;;  %v1718_v52 = vadd.f32 %v1682_v28, %v545_v49  ;;  %1336 = vmatmul.msk.f32.gmra.mxu2 %vm482_vm5, %v703_v47 }
 0x169   : > { %v1444_v53 = vpop.eup %1443  ;;  %v644_v54 = vadd.f32 %v1442_v42, %v643_v50  ;;  %v1323_v55 = vmul.f32 -1.442695, %v1718_v52 }
 0x16a   : > { %v1446_v56 = vpop.eup %1445  ;;  %v578_v51 = vadd.f32 1.0, %v1444_v53 }
 0x16b   : > { %v648_v59 = vsel %vm647_vm7, %v1442_v42, %v644_v54  ;;  %v656_v60 = vmul.f32 %v1446_v56, %v577_v40  ;;  %1447 = vpow2.f32 %v1323_v55  ;;  %vm661_vm9 = vweird.f32 %v1446_v56 }
 0x16c   : > { %v653_v61 = vsel %vm650_vm8, %v652_v58, %v648_v59  ;;  %1449 = vrcp.f32 %v578_v51  ;;  %vm662_vm11 = vmor %vm660_vm10, %vm661_vm9  ;;  %v681_v12 = vand.u32 2147483648, %v578_v51  ;;  %v679_v9 = vand.u32 2147483647, %v578_v51 }
 0x16d   : > { %v704_v28 = vmul.f32 %v653_v61, %v1701_v2  ;;  %v657_v62 = vsub.f32 1.0, %v656_v60  ;;  %vm675_vm14 = vweird.f32 %v578_v51 }
 0x16e   : > { %v682_v16 = vor.u32 1.1754944e-38, %v681_v12  ;;  %vm680_vm0 = vcmp.eq.f32.partialorder %v679_v9, 8.507059e+37 }
 0x16f   : > { %v658_v0 = vmul.f32 %v1446_v56, %v657_v62  ;;  %1337 = vmatmul.msk.f32.gmra.mxu2 %vm482_vm5, %v704_v28 }
 0x171   : > { %v1448_v1 = vpop.eup %1447  ;;  %v659_v3 = vadd.f32 %v1446_v56, %v658_v0 }
 0x172   : > { %v1450_v4 = vpop.eup %1449  ;;  %v579_v6 = vadd.f32 1.0, %v1448_v1 }
 0x173   : > { %v663_v7 = vsel %vm662_vm11, %v1446_v56, %v659_v3  ;;  %v671_v8 = vmul.f32 %v1450_v4, %v578_v51  ;;  %vm676_vm13 = vweird.f32 %v1450_v4 }
 0x174   : > { %v668_v10 = vsel %vm665_vm12, %v667_v5, %v663_v7  ;;  %1451 = vrcp.f32 %v579_v6  ;;  %vm677_vm15 = vmor %vm675_vm14, %vm676_vm13  ;;  %v694_v25 = vand.u32 2147483647, %v579_v6  ;;  %vm690_vm2 = vweird.f32 %v579_v6 }
 0x175   : > { %v705_v2 = vmul.f32 %v668_v10, %v1706_v19  ;;  %v672_v11 = vsub.f32 1.0, %v671_v8  ;;  %v696_v19 = vand.u32 2147483648, %v579_v6 }
 0x176   : > { %vm695_vm4 = vcmp.eq.f32.partialorder %v694_v25, 8.507059e+37 }
 0x177   : > { %v673_v13 = vmul.f32 %v1450_v4, %v672_v11  ;;  %1338 = vmatmul.msk.f32.gmra.mxu2 %vm482_vm5, %v705_v2  ;;  %v697_v27 = vor.u32 1.1754944e-38, %v696_v19 }
 0x179   : > { %v674_v14 = vadd.f32 %v1450_v4, %v673_v13 }
 0x17a   : > { %v1452_v15 = vpop.eup %1451 }
 0x17b   : > { %v678_v17 = vsel %vm677_vm15, %v1450_v4, %v674_v14  ;;  %v686_v20 = vmul.f32 %v1452_v15, %v579_v6  ;;  %vm691_vm1 = vweird.f32 %v1452_v15 }
 0x17c   : > { %v683_v21 = vsel %vm680_vm0, %v682_v16, %v678_v17  ;;  %vm692_vm3 = vmor %vm690_vm2, %vm691_vm1 }
 0x17d   : > { %v706_v22 = vmul.f32 %v683_v21, %v1712_v36  ;;  %v687_v23 = vsub.f32 1.0, %v686_v20  ;;  %v1352_v36 = vld [vmem:[%s1871_s3 + $0x98] sm:$0xff] }
 0x17e   : > { %997 = vmatpush.msra.mxu3 %v1352_v36 }
 0x17f   : > { %v688_v24 = vmul.f32 %v1452_v15, %v687_v23  ;;  %1339 = vmatmul.msk.f32.gmra.mxu2 %vm482_vm5, %v706_v22 }
 0x180   : > { %998 = vmatpush.msra.mxu3 %v1351_v37 }
 0x181   : > { %v689_v26 = vadd.f32 %v1452_v15, %v688_v24 }
 0x182   : > { %999 = vmatpush.msra.mxu3 %v1350_v39 }
 0x183   : > { %v693_v29 = vsel %vm692_vm3, %v1452_v15, %v689_v26 }
 0x184   : > { %v698_v31 = vsel %vm695_vm4, %v697_v27, %v693_v29  ;;  %1000 = vmatpush.msra.mxu3 %v1349_v43 }
 0x185   : > { %v707_v32 = vmul.f32 %v698_v31, %v1718_v52 }
 0x187   : > { %1340 = vmatmul.msk.f32.gmra.mxu2 %vm482_vm5, %v707_v32 }
 0x1d2   : > { %v763_v42 = vpop.f32.mrf.mxu2 }
 0x1d3   : > { %v764_v40 = vadd.f32 %v1751_v38, %v763_v42 }
 0x1d5   : > { %v1341_v44 = vmul.f32 -1.442695, %v764_v40 }
 0x1d7   : > { %1453 = vpow2.f32 %v1341_v44 }
 0x1da   : > { %v766_v45 = vpop.f32.mrf.mxu2 }
 0x1db   : > { %v767_v46 = vadd.f32 %v1751_v38, %v766_v45 }
 0x1dd   : > { %v1454_v47 = vpop.eup %1453  ;;  %v1342_v48 = vmul.f32 -1.442695, %v767_v46 }
 0x1de   : > { %v811_v41 = vadd.f32 1.0, %v1454_v47 }
 0x1df   : > { %1455 = vpow2.f32 %v1342_v48 }
 0x1e0   : > { %1457 = vrcp.f32 %v811_v41  ;;  %v830_v58 = vand.u32 2147483648, %v811_v41  ;;  %v828_v60 = vand.u32 2147483647, %v811_v41  ;;  %vm824_vm7 = vweird.f32 %v811_v41 }
 0x1e2   : > { %v769_v49 = vpop.f32.mrf.mxu2  ;;  %v831_v57 = vor.u32 1.1754944e-38, %v830_v58  ;;  %vm829_vm9 = vcmp.eq.f32.partialorder %v828_v60, 8.507059e+37 }
 0x1e3   : > { %v1762_v50 = vadd.f32 %v1751_v38, %v769_v49 }
 0x1e5   : > { %v1456_v18 = vpop.eup %1455  ;;  %v1343_v52 = vmul.f32 -1.442695, %v1762_v50 }
 0x1e6   : > { %v1458_v53 = vpop.eup %1457  ;;  %v812_v54 = vadd.f32 1.0, %v1456_v18 }
 0x1e7   : > { %v820_v55 = vmul.f32 %v1458_v53, %v811_v41  ;;  %1459 = vpow2.f32 %v1343_v52  ;;  %vm825_vm6 = vweird.f32 %v1458_v53 }
 0x1e8   : > { %1461 = vrcp.f32 %v812_v54  ;;  %vm826_vm8 = vmor %vm824_vm7, %vm825_vm6  ;;  %v845_v8 = vand.u32 2147483648, %v812_v54  ;;  %v843_v11 = vand.u32 2147483647, %v812_v54  ;;  %vm839_vm11 = vweird.f32 %v812_v54 }
 0x1e9   : > { %v821_v56 = vsub.f32 1.0, %v820_v55 }
 0x1ea   : > { %v772_v51 = vpop.f32.mrf.mxu2  ;;  %v846_v16 = vor.u32 1.1754944e-38, %v845_v8  ;;  %vm844_vm13 = vcmp.eq.f32.partialorder %v843_v11, 8.507059e+37 }
 0x1eb   : > { %v822_v59 = vmul.f32 %v1458_v53, %v821_v56  ;;  %v1766_v61 = vadd.f32 %v1751_v38, %v772_v51 }
 0x1ed   : > { %v1460_v28 = vpop.eup %1459  ;;  %v823_v62 = vadd.f32 %v1458_v53, %v822_v59  ;;  %v1344_v63 = vmul.f32 -1.442695, %v1766_v61 }
 0x1ee   : > { %v1462_v0 = vpop.eup %1461  ;;  %v813_v1 = vadd.f32 1.0, %v1460_v28 }
 0x1ef   : > { %v827_v3 = vsel %vm826_vm8, %v1458_v53, %v823_v62  ;;  %v835_v4 = vmul.f32 %v1462_v0, %v812_v54  ;;  %1463 = vpow2.f32 %v1344_v63  ;;  %vm840_vm10 = vweird.f32 %v1462_v0 }
 0x1f0   : > { %v832_v5 = vsel %vm829_vm9, %v831_v57, %v827_v3  ;;  %1465 = vrcp.f32 %v813_v1  ;;  %vm841_vm12 = vmor %vm839_vm11, %vm840_vm10  ;;  %v860_v24 = vand.u32 2147483648, %v813_v1  ;;  %v858_v27 = vand.u32 2147483647, %v813_v1 }
 0x1f1   : > { %v939_v6 = vmul.f32 %v832_v5, %v764_v40  ;;  %v836_v7 = vsub.f32 1.0, %v835_v4  ;;  %vm854_vm15 = vweird.f32 %v813_v1 }
 0x1f2   : > { %v775_v10 = vpop.f32.mrf.mxu2  ;;  %v861_v34 = vor.u32 1.1754944e-38, %v860_v24  ;;  %vm859_vm1 = vcmp.eq.f32.partialorder %v858_v27, 8.507059e+37 }
 0x1f3   : > { %v837_v2 = vmul.f32 %v1462_v0, %v836_v7  ;;  %v1770_v12 = vadd.f32 %v1751_v38, %v775_v10  ;;  %1358 = vmatmul.msk.f32.vlgmr.msra.gmra.mxu3 %vm482_vm5, %v939_v6 }
 0x1f5   : > { %v1464_v13 = vpop.eup %1463  ;;  %v838_v9 = vadd.f32 %v1462_v0, %v837_v2  ;;  %v1345_v14 = vmul.f32 -1.442695, %v1770_v12 }
 0x1f6   : > { %v1466_v15 = vpop.eup %1465  ;;  %v814_v17 = vadd.f32 1.0, %v1464_v13 }
 0x1f7   : > { %v842_v20 = vsel %vm841_vm12, %v1462_v0, %v838_v9  ;;  %v850_v21 = vmul.f32 %v1466_v15, %v813_v1  ;;  %1467 = vpow2.f32 %v1345_v14  ;;  %vm855_vm14 = vweird.f32 %v1466_v15 }
 0x1f8   : > { %v847_v22 = vsel %vm844_vm13, %v846_v16, %v842_v20  ;;  %1469 = vrcp.f32 %v814_v17  ;;  %vm856_vm0 = vmor %vm854_vm15, %vm855_vm14  ;;  %v875_v40 = vand.u32 2147483648, %v814_v17  ;;  %vm869_vm3 = vweird.f32 %v814_v17 }
 0x1f9   : > { %v940_v23 = vmul.f32 %v847_v22, %v767_v46  ;;  %v851_v19 = vsub.f32 1.0, %v850_v21  ;;  %v873_v46 = vand.u32 2147483647, %v814_v17 }
 0x1fa   : > { %v778_v25 = vpop.f32.mrf.mxu2  ;;  %v876_v52 = vor.u32 1.1754944e-38, %v875_v40  ;;  %v1802_v40 = vld [vmem:[%s1872_s4 + $0x2] ss:$0 sm:$0xff] }
 0x1fb   : > { %v852_v26 = vmul.f32 %v1466_v15, %v851_v19  ;;  %v1775_v29 = vadd.f32 %v1751_v38, %v778_v25  ;;  %1359 = vmatmul.msk.f32.gmra.mxu3 %vm482_vm5, %v940_v23  ;;  %vm874_vm6 = vcmp.eq.f32.partialorder %v873_v46, 8.507059e+37 }
 0x1fd   : > { %v1468_v31 = vpop.eup %1467  ;;  %v853_v32 = vadd.f32 %v1466_v15, %v852_v26  ;;  %v1346_v30 = vmul.f32 -1.442695, %v1775_v29 }
 0x1fe   : > { %v1470_v33 = vpop.eup %1469  ;;  %v815_v35 = vadd.f32 1.0, %v1468_v31 }
 0x1ff   : > { %v857_v36 = vsel %vm856_vm0, %v1466_v15, %v853_v32  ;;  %v865_v37 = vmul.f32 %v1470_v33, %v814_v17  ;;  %1471 = vpow2.f32 %v1346_v30  ;;  %vm870_vm2 = vweird.f32 %v1470_v33 }
 0x200   : > { %v862_v39 = vsel %vm859_vm1, %v861_v34, %v857_v36  ;;  %1473 = vrcp.f32 %v815_v35  ;;  %vm871_vm4 = vmor %vm869_vm3, %vm870_vm2  ;;  %v890_v51 = vand.u32 2147483648, %v815_v35  ;;  %v888_v28 = vand.u32 2147483647, %v815_v35 }
 0x201   : > { %v941_v42 = vmul.f32 %v862_v39, %v1762_v50  ;;  %v866_v43 = vsub.f32 1.0, %v865_v37  ;;  %vm884_vm8 = vweird.f32 %v815_v35 }
 0x202   : > { %v781_v44 = vpop.f32.mrf.mxu2  ;;  %v891_v3 = vor.u32 1.1754944e-38, %v890_v51  ;;  %vm889_vm10 = vcmp.eq.f32.partialorder %v888_v28, 8.507059e+37 }
 0x203   : > { %v867_v45 = vmul.f32 %v1470_v33, %v866_v43  ;;  %v1781_v47 = vadd.f32 %v1751_v38, %v781_v44  ;;  %1360 = vmatmul.msk.f32.gmra.mxu3 %vm482_vm5, %v941_v42 }
 0x205   : > { %v1472_v48 = vpop.eup %1471  ;;  %v868_v41 = vadd.f32 %v1470_v33, %v867_v45  ;;  %v1347_v49 = vmul.f32 -1.442695, %v1781_v47 }
 0x206   : > { %v1474_v18 = vpop.eup %1473  ;;  %v816_v50 = vadd.f32 1.0, %v1472_v48 }
 0x207   : > { %v872_v53 = vsel %vm871_vm4, %v1470_v33, %v868_v41  ;;  %v880_v54 = vmul.f32 %v1474_v18, %v815_v35  ;;  %1475 = vpow2.f32 %v1347_v49  ;;  %vm885_vm7 = vweird.f32 %v1474_v18 }
 0x208   : > { %v877_v55 = vsel %vm874_vm6, %v876_v52, %v872_v53  ;;  %1477 = vrcp.f32 %v816_v50  ;;  %vm886_vm9 = vmor %vm884_vm8, %vm885_vm7  ;;  %v905_v8 = vand.u32 2147483648, %v816_v50  ;;  %v903_v2 = vand.u32 2147483647, %v816_v50 }
 0x209   : > { %v942_v56 = vmul.f32 %v877_v55, %v1766_v61  ;;  %v881_v58 = vsub.f32 1.0, %v880_v54  ;;  %vm899_vm12 = vweird.f32 %v816_v50 }
 0x20a   : > { %v784_v59 = vpop.f32.mrf.mxu2  ;;  %v906_v14 = vor.u32 1.1754944e-38, %v905_v8  ;;  %vm904_vm14 = vcmp.eq.f32.partialorder %v903_v2, 8.507059e+37 }
 0x20b   : > { %v882_v60 = vmul.f32 %v1474_v18, %v881_v58  ;;  %v1787_v62 = vadd.f32 %v1751_v38, %v784_v59  ;;  %1361 = vmatmul.msk.f32.gmra.mxu3 %vm482_vm5, %v942_v56 }
 0x20d   : > { %v1476_v63 = vpop.eup %1475  ;;  %v883_v0 = vadd.f32 %v1474_v18, %v882_v60  ;;  %v1348_v57 = vmul.f32 -1.442695, %v1787_v62 }
 0x20e   : > { %v1478_v1 = vpop.eup %1477  ;;  %v817_v61 = vadd.f32 1.0, %v1476_v63 }
 0x20f   : > { %v887_v4 = vsel %vm886_vm9, %v1474_v18, %v883_v0  ;;  %v895_v5 = vmul.f32 %v1478_v1, %v816_v50  ;;  %1479 = vpow2.f32 %v1348_v57  ;;  %vm900_vm11 = vweird.f32 %v1478_v1 }
 0x210   : > { %v892_v6 = vsel %vm889_vm10, %v891_v3, %v887_v4  ;;  %1481 = vrcp.f32 %v817_v61  ;;  %vm901_vm13 = vmor %vm899_vm12, %vm900_vm11  ;;  %v920_v22 = vand.u32 2147483648, %v817_v61  ;;  %v918_v19 = vand.u32 2147483647, %v817_v61 }
 0x211   : > { %v943_v38 = vmul.f32 %v892_v6, %v1770_v12  ;;  %v896_v7 = vsub.f32 1.0, %v895_v5  ;;  %vm914_vm0 = vweird.f32 %v817_v61 }
 0x212   : > { %v921_v26 = vor.u32 1.1754944e-38, %v920_v22  ;;  %vm919_vm2 = vcmp.eq.f32.partialorder %v918_v19, 8.507059e+37 }
 0x213   : > { %v897_v10 = vmul.f32 %v1478_v1, %v896_v7  ;;  %1362 = vmatmul.msk.f32.gmra.mxu3 %vm482_vm5, %v943_v38 }
 0x215   : > { %v1480_v11 = vpop.eup %1479  ;;  %v898_v13 = vadd.f32 %v1478_v1, %v897_v10 }
 0x216   : > { %v1482_v9 = vpop.eup %1481  ;;  %v818_v15 = vadd.f32 1.0, %v1480_v11 }
 0x217   : > { %v902_v16 = vsel %vm901_vm13, %v1478_v1, %v898_v13  ;;  %v910_v17 = vmul.f32 %v1482_v9, %v817_v61  ;;  %vm915_vm15 = vweird.f32 %v1482_v9 }
 0x218   : > { %v907_v20 = vsel %vm904_vm14, %v906_v14, %v902_v16  ;;  %1483 = vrcp.f32 %v818_v15  ;;  %vm916_vm1 = vmor %vm914_vm0, %vm915_vm15  ;;  %v933_v35 = vand.u32 2147483647, %v818_v15  ;;  %vm929_vm4 = vweird.f32 %v818_v15 }
 0x219   : > { %v944_v12 = vmul.f32 %v907_v20, %v1775_v29  ;;  %v911_v21 = vsub.f32 1.0, %v910_v17  ;;  %v935_v29 = vand.u32 2147483648, %v818_v15 }
 0x21a   : > { %vm934_vm7 = vcmp.eq.f32.partialorder %v933_v35, 8.507059e+37 }
 0x21b   : > { %v912_v23 = vmul.f32 %v1482_v9, %v911_v21  ;;  %1363 = vmatmul.msk.f32.gmra.mxu3 %vm482_vm5, %v944_v12  ;;  %v936_v37 = vor.u32 1.1754944e-38, %v935_v29 }
 0x21d   : > { %v913_v24 = vadd.f32 %v1482_v9, %v912_v23 }
 0x21e   : > { %v1484_v25 = vpop.eup %1483 }
 0x21f   : > { %v917_v27 = vsel %vm916_vm1, %v1482_v9, %v913_v24  ;;  %v925_v31 = vmul.f32 %v1484_v25, %v818_v15  ;;  %vm930_vm3 = vweird.f32 %v1484_v25 }
 0x220   : > { %v922_v32 = vsel %vm919_vm2, %v921_v26, %v917_v27  ;;  %vm931_vm6 = vmor %vm929_vm4, %vm930_vm3 }
 0x221   : > { %v945_v30 = vmul.f32 %v922_v32, %v1781_v47  ;;  %v926_v33 = vsub.f32 1.0, %v925_v31 }
 0x223   : > { %v927_v34 = vmul.f32 %v1484_v25, %v926_v33  ;;  %1364 = vmatmul.msk.f32.gmra.mxu3 %vm482_vm5, %v945_v30 }
 0x225   : > { %v928_v36 = vadd.f32 %v1484_v25, %v927_v34 }
 0x227   : > { %v932_v39 = vsel %vm931_vm6, %v1484_v25, %v928_v36 }
 0x228   : > { %v937_v42 = vsel %vm934_vm7, %v936_v37, %v932_v39 }
 0x229   : > { %v946_v43 = vmul.f32 %v937_v42, %v1787_v62 }
 0x22b   : > { %1365 = vmatmul.msk.f32.gmra.mxu3 %vm482_vm5, %v946_v43 }
 0x276   : > { %v1002_v44 = vpop.f32.mrf.mxu3 }
 0x277   : > { %v1805_v45 = vadd.f32 %v1802_v40, %v1002_v44 }
 0x279   : > { %v1366_v46 = vmul.f32 -1.442695, %v1805_v45 }
 0x27b   : > { %1485 = vpow2.f32 %v1366_v46 }
 0x27e   : > { %v1005_v47 = vpop.f32.mrf.mxu3 }
 0x27f   : > { %v1809_v48 = vadd.f32 %v1802_v40, %v1005_v47 }
 0x281   : > { %v1486_v41 = vpop.eup %1485  ;;  %v1367_v49 = vmul.f32 -1.442695, %v1809_v48 }
 0x282   : > { %v1050_v18 = vadd.f32 1.0, %v1486_v41 }
 0x283   : > { %1487 = vpow2.f32 %v1367_v49 }
 0x284   : > { %1489 = vrcp.f32 %v1050_v18  ;;  %v1069_v60 = vand.u32 2147483648, %v1050_v18  ;;  %v1067_v63 = vand.u32 2147483647, %v1050_v18  ;;  %vm1063_vm8 = vweird.f32 %v1050_v18 }
 0x286   : > { %v1008_v52 = vpop.f32.mrf.mxu3  ;;  %v1070_v4 = vor.u32 1.1754944e-38, %v1069_v60  ;;  %vm1068_vm10 = vcmp.eq.f32.partialorder %v1067_v63, 8.507059e+37 }
 0x287   : > { %v1813_v50 = vadd.f32 %v1802_v40, %v1008_v52 }
 0x289   : > { %v1488_v53 = vpop.eup %1487  ;;  %v1368_v54 = vmul.f32 -1.442695, %v1813_v50 }
 0x28a   : > { %v1490_v55 = vpop.eup %1489  ;;  %v1051_v56 = vadd.f32 1.0, %v1488_v53 }
 0x28b   : > { %1491 = vpow2.f32 %v1368_v54  ;;  %v1059_v58 = vmul.f32 %v1490_v55, %v1050_v18  ;;  %vm1064_vm5 = vweird.f32 %v1490_v55 }
 0x28c   : > { %1493 = vrcp.f32 %v1051_v56  ;;  %vm1065_vm9 = vmor %vm1063_vm8, %vm1064_vm5  ;;  %v1084_v10 = vand.u32 2147483648, %v1051_v56  ;;  %v1082_v13 = vand.u32 2147483647, %v1051_v56  ;;  %vm1078_vm12 = vweird.f32 %v1051_v56 }
 0x28d   : > { %v1060_v51 = vsub.f32 1.0, %v1059_v58 }
 0x28e   : > { %v1011_v59 = vpop.f32.mrf.mxu3  ;;  %v1085_v20 = vor.u32 1.1754944e-38, %v1084_v10  ;;  %vm1083_vm14 = vcmp.eq.f32.partialorder %v1082_v13, 8.507059e+37 }
 0x28f   : > { %v1817_v28 = vadd.f32 %v1802_v40, %v1011_v59  ;;  %v1061_v62 = vmul.f32 %v1490_v55, %v1060_v51 }
 0x291   : > { %v1492_v0 = vpop.eup %1491  ;;  %v1369_v57 = vmul.f32 -1.442695, %v1817_v28  ;;  %v1062_v1 = vadd.f32 %v1490_v55, %v1061_v62 }
 0x292   : > { %v1494_v3 = vpop.eup %1493  ;;  %v1052_v61 = vadd.f32 1.0, %v1492_v0 }
 0x293   : > { %1495 = vpow2.f32 %v1369_v57  ;;  %v1066_v5 = vsel %vm1065_vm9, %v1490_v55, %v1062_v1  ;;  %v1074_v6 = vmul.f32 %v1494_v3, %v1051_v56  ;;  %vm1079_vm11 = vweird.f32 %v1494_v3 }
 0x294   : > { %1497 = vrcp.f32 %v1052_v61  ;;  %v1071_v38 = vsel %vm1068_vm10, %v1070_v4, %v1066_v5  ;;  %vm1080_vm13 = vmor %vm1078_vm12, %vm1079_vm11  ;;  %v1099_v24 = vand.u32 2147483648, %v1052_v61  ;;  %v1097_v27 = vand.u32 2147483647, %v1052_v61 }
 0x295   : > { %1186 = vrot.lane.b32.xlu0 %v1071_v38, %s1525_s21  ;;  %v1075_v7 = vsub.f32 1.0, %v1074_v6  ;;  %vm1093_vm0 = vweird.f32 %v1052_v61 }
 0x296   : > { %v1014_v8 = vpop.f32.mrf.mxu3  ;;  %v1100_v34 = vor.u32 1.1754944e-38, %v1099_v24  ;;  %vm1098_vm2 = vcmp.eq.f32.partialorder %v1097_v27, 8.507059e+37 }
 0x297   : > { %v1822_v2 = vadd.f32 %v1802_v40, %v1014_v8  ;;  %v1076_v11 = vmul.f32 %v1494_v3, %v1075_v7 }
 0x299   : > { %v1496_v9 = vpop.eup %1495  ;;  %v1370_v14 = vmul.f32 -1.442695, %v1822_v2  ;;  %v1077_v15 = vadd.f32 %v1494_v3, %v1076_v11 }
 0x29a   : > { %v1498_v16 = vpop.eup %1497  ;;  %v1053_v17 = vadd.f32 1.0, %v1496_v9 }
 0x29b   : > { %1499 = vpow2.f32 %v1370_v14  ;;  %v1081_v12 = vsel %vm1080_vm13, %v1494_v3, %v1077_v15  ;;  %v1089_v21 = vmul.f32 %v1498_v16, %v1052_v61  ;;  %vm1094_vm15 = vweird.f32 %v1498_v16 }
 0x29c   : > { %1501 = vrcp.f32 %v1053_v17  ;;  %v1086_v22 = vsel %vm1083_vm14, %v1085_v20, %v1081_v12  ;;  %vm1095_vm1 = vmor %vm1093_vm0, %vm1094_vm15  ;;  %v1114_v43 = vand.u32 2147483648, %v1053_v17  ;;  %v1112_v47 = vand.u32 2147483647, %v1053_v17 }
 0x29d   : > { %1188 = vrot.lane.b32.xlu0 %v1086_v22, %s1525_s21  ;;  %v1090_v23 = vsub.f32 1.0, %v1089_v21  ;;  %vm1108_vm4 = vweird.f32 %v1053_v17 }
 0x29e   : > { %v1017_v19 = vpop.f32.mrf.mxu3  ;;  %v1115_v54 = vor.u32 1.1754944e-38, %v1114_v43  ;;  %vm1113_vm7 = vcmp.eq.f32.partialorder %v1112_v47, 8.507059e+37 }
 0x29f   : > { %v1827_v25 = vadd.f32 %v1802_v40, %v1017_v19  ;;  %v1091_v26 = vmul.f32 %v1498_v16, %v1090_v23 }
 0x2a1   : > { %v1500_v31 = vpop.eup %1499  ;;  %v1371_v32 = vmul.f32 -1.442695, %v1827_v25  ;;  %v1092_v30 = vadd.f32 %v1498_v16, %v1091_v26 }
 0x2a2   : > { %v1502_v33 = vpop.eup %1501  ;;  %v1054_v29 = vadd.f32 1.0, %v1500_v31 }
 0x2a3   : > { %1503 = vpow2.f32 %v1371_v32  ;;  %v1096_v35 = vsel %vm1095_vm1, %v1498_v16, %v1092_v30  ;;  %v1104_v36 = vmul.f32 %v1502_v33, %v1053_v17  ;;  %vm1109_vm3 = vweird.f32 %v1502_v33 }
 0x2a4   : > { %1505 = vrcp.f32 %v1054_v29  ;;  %v1101_v37 = vsel %vm1098_vm2, %v1100_v34, %v1096_v35  ;;  %vm1110_vm6 = vmor %vm1108_vm4, %vm1109_vm3  ;;  %v1129_v60 = vand.u32 2147483648, %v1054_v29  ;;  %v1127_v0 = vand.u32 2147483647, %v1054_v29 }
 0x2a5   : > { %1190 = vrot.lane.b32.xlu1 %v1101_v37, %s1525_s21  ;;  %v1105_v39 = vsub.f32 1.0, %v1104_v36  ;;  %vm1123_vm8 = vweird.f32 %v1054_v29 }
 0x2a6   : > { %v1020_v42 = vpop.f32.mrf.mxu3  ;;  %v1130_v5 = vor.u32 1.1754944e-38, %v1129_v60  ;;  %vm1128_vm10 = vcmp.eq.f32.partialorder %v1127_v0, 8.507059e+37 }
 0x2a7   : > { %v1832_v44 = vadd.f32 %v1802_v40, %v1020_v42  ;;  %v1106_v46 = vmul.f32 %v1502_v33, %v1105_v39 }
 0x2a9   : > { %v1504_v41 = vpop.eup %1503  ;;  %v1372_v49 = vmul.f32 -1.442695, %v1832_v44  ;;  %v1107_v18 = vadd.f32 %v1502_v33, %v1106_v46 }
 0x2aa   : > { %v1506_v52 = vpop.eup %1505  ;;  %v1055_v53 = vadd.f32 1.0, %v1504_v41 }
 0x2ab   : > { %1507 = vpow2.f32 %v1372_v49  ;;  %v1111_v55 = vsel %vm1110_vm6, %v1502_v33, %v1107_v18  ;;  %v1119_v56 = vmul.f32 %v1506_v52, %v1054_v29  ;;  %vm1124_vm5 = vweird.f32 %v1506_v52 }
 0x2ac   : > { %1509 = vrcp.f32 %v1055_v53  ;;  %v1116_v58 = vsel %vm1113_vm7, %v1115_v54, %v1111_v55  ;;  %vm1125_vm9 = vmor %vm1123_vm8, %vm1124_vm5  ;;  %v1144_v8 = vand.u32 2147483648, %v1055_v53  ;;  %v1142_v11 = vand.u32 2147483647, %v1055_v53 }
 0x2ad   : > { %1192 = vrot.lane.b32.xlu1 %v1116_v58, %s1525_s21  ;;  %v1120_v51 = vsub.f32 1.0, %v1119_v56  ;;  %vm1138_vm12 = vweird.f32 %v1055_v53  ;;  %vm1218_vm5 = vcmask 31744  }
 0x2ae   : > { %v1023_v59 = vpop.f32.mrf.mxu3  ;;  %v1145_v16 = vor.u32 1.1754944e-38, %v1144_v8  ;;  %vm1143_vm14 = vcmp.eq.f32.partialorder %v1142_v11, 8.507059e+37 }
 0x2af   : > { %v1837_v62 = vadd.f32 %v1802_v40, %v1023_v59  ;;  %v1121_v63 = vmul.f32 %v1506_v52, %v1120_v51 }
 0x2b1   : > { %v1508_v57 = vpop.eup %1507  ;;  %v1373_v1 = vmul.f32 -1.442695, %v1837_v62  ;;  %v1122_v3 = vadd.f32 %v1506_v52, %v1121_v63 }
 0x2b2   : > { %v1510_v61 = vpop.eup %1509  ;;  %v1056_v4 = vadd.f32 1.0, %v1508_v57 }
 0x2b3   : > { %1511 = vpow2.f32 %v1373_v1  ;;  %v1126_v6 = vsel %vm1125_vm9, %v1506_v52, %v1122_v3  ;;  %v1134_v38 = vmul.f32 %v1510_v61, %v1055_v53  ;;  %vm1139_vm11 = vweird.f32 %v1510_v61 }
 0x2b4   : > { %1513 = vrcp.f32 %v1056_v4  ;;  %v1131_v7 = vsel %vm1128_vm10, %v1130_v5, %v1126_v6  ;;  %vm1140_vm13 = vmor %vm1138_vm12, %vm1139_vm11  ;;  %v1159_v22 = vand.u32 2147483648, %v1056_v4  ;;  %v1157_v19 = vand.u32 2147483647, %v1056_v4 }
 0x2b5   : > { %1194 = vrot.lane.b32.xlu2 %v1131_v7, %s1525_s21  ;;  %v1135_v40 = vsub.f32 1.0, %v1134_v38  ;;  %vm1153_vm0 = vweird.f32 %v1056_v4 }
 0x2b6   : > { %v1160_v27 = vor.u32 1.1754944e-38, %v1159_v22  ;;  %vm1158_vm2 = vcmp.eq.f32.partialorder %v1157_v19, 8.507059e+37 }
 0x2b7   : > { %v1136_v10 = vmul.f32 %v1510_v61, %v1135_v40 }
 0x2b9   : > { %v1512_v13 = vpop.eup %1511  ;;  %v1137_v9 = vadd.f32 %v1510_v61, %v1136_v10 }
 0x2ba   : > { %v1514_v14 = vpop.eup %1513  ;;  %v1057_v15 = vadd.f32 1.0, %v1512_v13 }
 0x2bb   : > { %v1141_v17 = vsel %vm1140_vm13, %v1510_v61, %v1137_v9  ;;  %v1149_v20 = vmul.f32 %v1514_v14, %v1056_v4  ;;  %vm1154_vm15 = vweird.f32 %v1514_v14 }
 0x2bc   : > { %1515 = vrcp.f32 %v1057_v15  ;;  %v1146_v12 = vsel %vm1143_vm14, %v1145_v16, %v1141_v17  ;;  %vm1155_vm1 = vmor %vm1153_vm0, %vm1154_vm15  ;;  %v1174_v29 = vand.u32 2147483648, %v1057_v15  ;;  %v1172_v35 = vand.u32 2147483647, %v1057_v15 }
 0x2bd   : > { %1196 = vrot.lane.b32.xlu2 %v1146_v12, %s1525_s21  ;;  %v1150_v21 = vsub.f32 1.0, %v1149_v20  ;;  %vm1168_vm4 = vweird.f32 %v1057_v15 }
 0x2be   : > { %v1175_v37 = vor.u32 1.1754944e-38, %v1174_v29  ;;  %vm1173_vm7 = vcmp.eq.f32.partialorder %v1172_v35, 8.507059e+37 }
 0x2bf   : > { %v1151_v23 = vmul.f32 %v1514_v14, %v1150_v21 }
 0x2c1   : > { %v1152_v24 = vadd.f32 %v1514_v14, %v1151_v23 }
 0x2c2   : > { %v1516_v26 = vpop.eup %1515 }
 0x2c3   : > { %v1156_v31 = vsel %vm1155_vm1, %v1514_v14, %v1152_v24  ;;  %v1164_v32 = vmul.f32 %v1516_v26, %v1057_v15  ;;  %vm1169_vm3 = vweird.f32 %v1516_v26 }
 0x2c4   : > { %v1161_v30 = vsel %vm1158_vm2, %v1160_v27, %v1156_v31  ;;  %vm1170_vm6 = vmor %vm1168_vm4, %vm1169_vm3 }
 0x2c5   : > { %1198 = vrot.lane.b32.xlu0 %v1161_v30, %s1525_s21  ;;  %v1165_v33 = vsub.f32 1.0, %v1164_v32 }
 0x2c7   : > { %v1166_v34 = vmul.f32 %v1516_v26, %v1165_v33 }
 0x2c9   : > { %v1167_v36 = vadd.f32 %v1516_v26, %v1166_v34 }
 0x2cb   : > { %v1171_v39 = vsel %vm1170_vm6, %v1516_v26, %v1167_v36 }
 0x2cc   : > { %v1176_v42 = vsel %vm1173_vm7, %v1175_v37, %v1171_v39 }
 0x2cd   : > { %1200 = vrot.lane.b32.xlu1 %v1176_v42, %s1525_s21 }
 0x307   : > { %v1187_v43 = vpop.permute.xlu0 %1186 }
 0x308   : > { %v1210_v46 = vmul.f32 %v1187_v43, %v1805_v45 }
 0x30a   : > { %1219 = vst.msk [vmem:[%s226_s25] sm:$0xff] %vm1218_vm5, %v1210_v46 }
 0x30f   : > { %v1195_v47 = vpop.permute.xlu2 %1194  ;;  %v1189_v41 = vpop.permute.xlu0 %1188 }
 0x310   : > { %v1214_v49 = vmul.f32 %v1195_v47, %v1822_v2  ;;  %v1211_v18 = vmul.f32 %v1189_v41, %v1809_v48 }
 0x312   : > { %1223 = vst.msk [vmem:[%s226_s25 + $0x20] sm:$0xff] %vm1218_vm5, %v1214_v49 }
 0x313   : > { %1220 = vst.msk [vmem:[%s226_s25 + $0x8] sm:$0xff] %vm1218_vm5, %v1211_v18 }
 0x317   : > { %v1197_v52 = vpop.permute.xlu2 %1196  ;;  %v1191_v53 = vpop.permute.xlu1 %1190 }
 0x318   : > { %v1215_v54 = vmul.f32 %v1197_v52, %v1827_v25  ;;  %v1212_v55 = vmul.f32 %v1191_v53, %v1813_v50 }
 0x31a   : > { %1224 = vst.msk [vmem:[%s226_s25 + $0x28] sm:$0xff] %vm1218_vm5, %v1215_v54 }
 0x31b   : > { %1221 = vst.msk [vmem:[%s226_s25 + $0x10] sm:$0xff] %vm1218_vm5, %v1212_v55 }
 0x31f   : > { %v1193_v45 = vpop.permute.xlu1 %1192 }
 0x320   : > { %v1213_v56 = vmul.f32 %v1193_v45, %v1817_v28 }
 0x322   : > { %1222 = vst.msk [vmem:[%s226_s25 + $0x18] sm:$0xff] %vm1218_vm5, %v1213_v56 }
 0x337   : > { %v1199_v48 = vpop.permute.xlu0 %1198 }
 0x338   : > { %v1216_v2 = vmul.f32 %v1199_v48, %v1832_v44 }
 0x33a   : > { %1225 = vst.msk [vmem:[%s226_s25 + $0x30] sm:$0xff] %vm1218_vm5, %v1216_v2 }
 0x33f   : > { %v1201_v58 = vpop.permute.xlu1 %1200 }
 0x340   : > { %v1217_v51 = vmul.f32 %v1201_v58, %v1837_v62 }
 0x342   : > { %1226 = vst.msk [vmem:[%s226_s25 + $0x38] sm:$0xff] %vm1218_vm5, %v1217_v51 }
 0x343 PF: > { %s15_s18 = sadd.s32 1, %s1523_s18  }
 0x344   : > { %p12_p4 = scmp.ge.s32.totalorder %s15_s18, 6  }
 0x346   :  { %14 = sbr.rel (!%p12_p4) target bundleno = 1 (0x1), region = 74 }

</bundles_post_ra>
